<compile_context>
chip_gen: v7x
topology: tpu7x:2x2x1
jax: 0.10.0
libtpu: 0.0.40
codegen_flags: <defaults>
</compile_context>

<pallas_src>
import jax
import jax.numpy as jnp
import numpy as np
from jax import lax
from jax.experimental import pallas as pl
from jax.experimental.pallas import tpu as pltpu


def _round_up(v, m):
    return ((v + m - 1) // m) * m


def _sublane(itemsize):
    # Mosaic second-minor padding: 8 (f32) / 16 (bf16) / 32 (int8/fp8).
    return {4: 8, 2: 16, 1: 32}.get(int(itemsize), 8)


def _vmem_capacity_bytes():
    try:
        return int(pltpu.get_tpu_info().vmem_capacity_bytes)
    except Exception:
        return 64 << 20  # conservative (v7x-sized) fallback


def _make_kernel(w_contract_axis):
    """y = x @ W' + b with W' contracted on `w_contract_axis` (0: (K,N) weight, 1: (N,K))."""
    def kernel(x_ref, w_ref, b_ref, o_ref):
        acc = lax.dot_general(
            x_ref[...], w_ref[...],
            dimension_numbers=(((1,), (w_contract_axis,)), ((), ())),
            preferred_element_type=jnp.float32,
        )
        o_ref[...] = (acc + b_ref[...].astype(jnp.float32)).astype(o_ref.dtype)
    return kernel


def _choose_pack_factor(batch, state_dim, action_dim, w_itemsize):
    """Largest power-of-two P dividing `batch` such that the packed output (P*action_dim
    lanes) approaches 128-lane density while the block-diagonal weight stays small."""
    if action_dim >= 128 or batch <= 0:
        return 1
    p = 1
    while p * action_dim < 128:
        nxt = p * 2
        if batch % nxt != 0:
            break
        if nxt * state_dim > 8192:                                   # keep K modest
            break
        if (nxt * state_dim) * (nxt * action_dim) * w_itemsize > (4 << 20):
            break
        p = nxt
    return p


def linear_q_network(x, weight, bias, *, block_rows=None):
    """Forward of LinearQNetwork: y = x @ weight.T + bias.

    x:      (batch, state_dim)
    weight: (action_dim, state_dim)   -- PyTorch nn.Linear convention
    bias:   (action_dim,)
    block_rows: optional override of the per-grid-step tile size, in *packed* rows.
    returns (batch, action_dim)
    """
    batch, state_dim = x.shape
    action_dim, s2 = weight.shape
    assert s2 == state_dim, "weight must be (action_dim, state_dim)"
    assert bias.shape == (action_dim,)

    in_isz = jnp.dtype(x.dtype).itemsize
    w_isz = jnp.dtype(weight.dtype).itemsize
    b_isz = jnp.dtype(bias.dtype).itemsize
    sub = _sublane(in_isz)

    # ---------------- packing (lane-dense output / dense MXU K) ----------------
    pack = _choose_pack_factor(batch, state_dim, action_dim, w_isz)
    if pack > 1:
        bp, sp, ap = batch // pack, pack * state_dim, pack * action_dim
        x_p = x.reshape(bp, sp)                            # free: row-major regroup of rows
        w_mat = jnp.kron(jnp.eye(pack, dtype=weight.dtype), weight.T)   # (Sp, Ap) block-diag
        b_mat = jnp.tile(bias, pack).reshape(1, ap)
        w_axis = 0
    else:
        bp, sp, ap = batch, state_dim, action_dim
        x_p = x
        w_mat = weight                                     # (A, S): contract on axis 1
        b_mat = bias.reshape(1, ap)
        w_axis = 1

    kernel = _make_kernel(w_axis)
    out_shape = jax.ShapeDtypeStruct((bp, ap), x.dtype)

    # ---------------- Mosaic-padding-aware VMEM accounting ----------------
    lanes_x = _round_up(sp, 128)
    lanes_o = _round_up(ap, 128)
    w_rows_pad = _round_up(w_mat.shape[0], _sublane(w_isz))
    w_lanes_pad = _round_up(w_mat.shape[1], 128)
    # weight + bias: resident but conservatively counted with 2 buffers each
    fixed_bytes = (2 * w_rows_pad * w_lanes_pad * w_isz
                   + 2 * _sublane(b_isz) * lanes_o * b_isz)
    # per packed row: double-buffered x tile + out tile, lane-padded
    row_bytes = 2 * lanes_x * in_isz + 2 * lanes_o * in_isz

    vmem_cap = _vmem_capacity_bytes()            # 64 MiB on v7x, 128 MiB on v5e/v6e
    tile_budget = vmem_cap * 7 // 10             # headroom for compiler scratch

    # ---------------- small path: one no-grid invocation ----------------
    single_bytes = (_round_up(bp, sub) * (lanes_x + lanes_o) * in_isz
                    + w_rows_pad * w_lanes_pad * w_isz
                    + _sublane(b_isz) * lanes_o * b_isz)
    if block_rows is None and single_bytes <= min(8 << 20, tile_budget // 2):
        out_p = pl.pallas_call(
            kernel,
            out_shape=out_shape,
            in_specs=[
                pl.BlockSpec(memory_space=pltpu.MemorySpace.VMEM),
                pl.BlockSpec(memory_space=pltpu.MemorySpace.VMEM),
                pl.BlockSpec(memory_space=pltpu.MemorySpace.VMEM),
            ],
            out_specs=pl.BlockSpec(memory_space=pltpu.MemorySpace.VMEM),
            compiler_params=pltpu.CompilerParams(
                vmem_limit_bytes=int(min(max(2 * single_bytes, 4 << 20),
                                         vmem_cap * 17 // 20))),
        )(x_p, w_mat, b_mat)
        return out_p.reshape(batch, action_dim)

    # ---------------- tiled path: batch grid, resident weight/bias ----------------
    if block_rows is not None:
        tb = max(sub, (int(block_rows) // sub) * sub)
    else:
        tb = max(sub, ((tile_budget - fixed_bytes) // row_bytes) // sub * sub)
    if bp > sub:
        # keep >= 2 grid blocks so the "parallel" axis can feed both TCs (v7x megacore)
        tb = min(tb, _round_up(pl.cdiv(bp, 2), sub))
    tb = max(sub, min(tb, _round_up(bp, sub)))

    num_blocks = pl.cdiv(bp, tb)                 # ragged last block handled by Pallas masking
    footprint = tb * row_bytes + fixed_bytes
    vmem_limit = int(min(max(footprint + footprint // 4 + (1 << 20), 4 << 20),
                         vmem_cap * 17 // 20))

    cost = pl.CostEstimate(
        flops=2 * bp * sp * ap,
        transcendentals=0,
        bytes_accessed=(bp * sp * in_isz + bp * ap * in_isz
                        + w_mat.size * w_isz + b_mat.size * b_isz),
    )

    out_p = pl.pallas_call(
        kernel,
        out_shape=out_shape,
        grid_spec=pltpu.PrefetchScalarGridSpec(
            num_scalar_prefetch=0,
            grid=(num_blocks,),
            in_specs=[
                pl.BlockSpec((tb, sp), lambda i: (i, 0)),       # batch tile of (packed) x
                pl.BlockSpec(w_mat.shape, lambda i: (0, 0)),    # weight: resident in VMEM
                pl.BlockSpec((1, ap), lambda i: (0, 0)),        # bias: resident in VMEM
            ],
            out_specs=pl.BlockSpec((tb, ap), lambda i: (i, 0)),
        ),
        compiler_params=pltpu.CompilerParams(
            dimension_semantics=("parallel",),   # shard batch tiles across TCs
            vmem_limit_bytes=vmem_limit,
        ),
        cost_estimate=cost,
    )(x_p, w_mat, b_mat)

    return out_p.reshape(batch, action_dim)


if __name__ == "__main__":
    # Deterministic parameter init, mimicking PyTorch nn.Linear default
    # (uniform in [-1/sqrt(state_dim), 1/sqrt(state_dim)]).
    state_dim, action_dim = 32, 4

    key = jax.random.PRNGKey(0)
    kx, kw, kb, kx2 = jax.random.split(key, 4)

    bound = 1.0 / (state_dim ** 0.5)
    weight = jax.random.uniform(
        kw, (action_dim, state_dim), jnp.float32, minval=-bound, maxval=bound)
    bias = jax.random.uniform(
        kb, (action_dim,), jnp.float32, minval=-bound, maxval=bound)

    def ref_forward(xv):
        return (np.asarray(xv, np.float64) @ np.asarray(weight, np.float64).T
                + np.asarray(bias, np.float64))

    # Small batch -> packed (P=8), single no-grid invocation.
    batch = 8
    x = jax.random.normal(kx, (batch, state_dim), jnp.float32)
    out = jax.block_until_ready(linear_q_network(x, weight, bias))
    assert out.shape == (batch, action_dim)
    assert np.allclose(np.asarray(out, np.float64), ref_forward(x), atol=1e-4, rtol=1e-4)

    # Larger batch with explicit tile override -> exercises the tiled "parallel" path
    # with a ragged final block (no wrapper-side pad/slice).
    big_batch = 1000
    x_big = jax.random.normal(kx2, (big_batch, state_dim), jnp.float32)
    out_big = jax.block_until_ready(
        linear_q_network(x_big, weight, bias, block_rows=32))
    assert out_big.shape == (big_batch, action_dim)
    assert np.allclose(np.asarray(out_big, np.float64), ref_forward(x_big),
                       atol=1e-4, rtol=1e-4)

    print("KERNEL_OK")
</pallas_src>

<mosaic_0001>
module attributes {stable_mosaic.version = 11 : i64} {
  func.func @kernel(%arg0: memref<1x256xf32, #tpu.memory_space<vmem>>, %arg1: memref<256x32xf32, #tpu.memory_space<vmem>>, %arg2: memref<1x32xf32, #tpu.memory_space<vmem>>, %arg3: memref<1x32xf32, #tpu.memory_space<vmem>>) attributes {dimension_semantics = [], scalar_prefetch = 0 : i64, scratch_operands = 0 : i64, tpu.core_type = #tpu.core_type<tc>} {
    %c0 = arith.constant 0 : index
    %c0_0 = arith.constant 0 : index
    %0 = vector.load %arg0[%c0, %c0_0] : memref<1x256xf32, #tpu.memory_space<vmem>>, vector<1x256xf32>
    %c0_1 = arith.constant 0 : index
    %c0_2 = arith.constant 0 : index
    %1 = vector.load %arg1[%c0_1, %c0_2] : memref<256x32xf32, #tpu.memory_space<vmem>>, vector<256x32xf32>
    %cst = arith.constant dense<0.000000e+00> : vector<1x32xf32>
    %2 = tpu.matmul %0, %1, %cst {dimension_numbers = #tpu.dot_dimension_numbers<[1], [0], [0], [1], [0, 0, 1, 1], [], []>} : vector<1x256xf32>, vector<256x32xf32>, vector<1x32xf32> -> vector<1x32xf32>
    %c0_3 = arith.constant 0 : index
    %c0_4 = arith.constant 0 : index
    %3 = vector.load %arg2[%c0_3, %c0_4] : memref<1x32xf32, #tpu.memory_space<vmem>>, vector<1x32xf32>
    %4 = arith.addf %2, %3 : vector<1x32xf32>
    %c0_5 = arith.constant 0 : index
    %c0_6 = arith.constant 0 : index
    %5 = vector.load %arg3[%c0_5, %c0_6] : memref<1x32xf32, #tpu.memory_space<vmem>>, vector<1x32xf32>
    tpu.vector_store %arg3[%c0_5, %c0_6], %4 {strides = array<i32>} : memref<1x32xf32, #tpu.memory_space<vmem>>, vector<1x32xf32>,
    return
  }
}

</mosaic_0001>

<bundles_post_ra>
// kernel: tpu_custom_call.1
= control target key start
LH: loop header
LB: loop body
LE: loop exit
PB: predicated region body
PF: predicated region fallthrough
CT: control target
= control target key end

     0   :  { %v50_v3 = vlaneseq  ;;  %s373_s0 = inlined_call_operand.vmem [shape: f32[1,256], index: 0, kind: input, shape index: {}]   ;;  %s374_s1 = inlined_call_operand.vmem [shape: f32[256,32], index: 1, kind: input, shape index: {}]   ;;  %s375_s2 = inlined_call_operand.vmem [shape: f32[1,32], index: 2, kind: input, shape index: {}]   ;;  %s376_s3 = inlined_call_operand.hbm [shape: f32[1,32], index: 3, kind: output, shape index: {}]  }
   0x1   :  { %v32_v0 = vld [vmem:[%s374_s1 + $0x80] sm:$0xff]  ;;  %v33_v1 = vld [vmem:[%s374_s1 + $0x88] sm:$0xff]  ;;  %v34_v6 = vld [vmem:[%s374_s1 + $0x90] sm:$0xff] }
   0x2   :  { %v16_v2 = vld [vmem:[%s374_s1] sm:$0xff]  ;;  %v181_v4 = vpack.c.bf16 %v33_v1, %v32_v0  ;;  %v17_v5 = vld [vmem:[%s374_s1 + $0x8] sm:$0xff]  ;;  %v35_v7 = vld [vmem:[%s374_s1 + $0x98] sm:$0xff]  ;;  %v51_v14 = vshrl.u32 %v50_v3, 7 }
   0x3   :  { %v183_v8 = vpack.c.bf16 %v17_v5, %v16_v2  ;;  %v185_v9 = vpack.c.bf16 %v35_v7, %v34_v6  ;;  %v18_v10 = vld [vmem:[%s374_s1 + $0x10] sm:$0xff]  ;;  %v19_v11 = vld [vmem:[%s374_s1 + $0x18] sm:$0xff]  ;;  %v36_v12 = vld [vmem:[%s374_s1 + $0xa0] sm:$0xff] }
   0x4   :  { %182 = vmatprep.subr.bf16.mxu0 %v181_v4  ;;  %v37_v13 = vld [vmem:[%s374_s1 + $0xa8] sm:$0xff]  ;;  %v187_v15 = vpack.c.bf16 %v19_v11, %v18_v10  ;;  %v20_v17 = vld [vmem:[%s374_s1 + $0x20] sm:$0xff]  ;;  %v38_v19 = vld [vmem:[%s374_s1 + $0xb0] sm:$0xff]  ;;  %v56_v21 = vsub.s32 1, %v51_v14 }
   0x5   :  { %184 = vmatpush3.bf16.msra.mxu0 %v183_v8  ;;  %v189_v16 = vpack.c.bf16 %v37_v13, %v36_v12  ;;  %v21_v18 = vld [vmem:[%s374_s1 + $0x28] sm:$0xff]  ;;  %v39_v20 = vld [vmem:[%s374_s1 + $0xb8] sm:$0xff]  ;;  %v22_v24 = vld [vmem:[%s374_s1 + $0x30] sm:$0xff] }
   0x6   :  { %186 = vmatprep.subr.bf16.mxu0 %v185_v9  ;;  %v191_v22 = vpack.c.bf16 %v21_v18, %v20_v17  ;;  %v193_v23 = vpack.c.bf16 %v39_v20, %v38_v19  ;;  %v23_v25 = vld [vmem:[%s374_s1 + $0x38] sm:$0xff]  ;;  %v40_v26 = vld [vmem:[%s374_s1 + $0xc0] sm:$0xff]  ;;  %v41_v27 = vld [vmem:[%s374_s1 + $0xc8] sm:$0xff] }
   0x7   :  { %v15_v28 = vld [vmem:[%s373_s0] sm:$0x3] }
   0x8   :  { %v57_v29 = vrot.slane %v15_v28, %v56_v21 }
   0x9   :  { %188 = vmatpush3.bf16.msra.mxu0 %v187_v15 }
   0xa   :  { %190 = vmatprep.subr.bf16.mxu0 %v189_v16 }
   0xb   :  { %8 = vsyncpa [#allocation3], 0  ;;  %v195_v30 = vpack.c.bf16 %v23_v25, %v22_v24  ;;  %v197_v31 = vpack.c.bf16 %v41_v27, %v40_v26  ;;  %v24_v32 = vld [vmem:[%s374_s1 + $0x40] sm:$0xff]  ;;  %v25_v33 = vld [vmem:[%s374_s1 + $0x48] sm:$0xff]  ;;  %124 = vmatprep.mubr.f32.mxu0 %v57_v29  ;;  %v52_v52 = vsub.s32 0, %v51_v14  ;;  %s238_s25 = smov [#allocation2]  }
   0xc   :  { %v42_v34 = vld [vmem:[%s374_s1 + $0xd0] sm:$0xff]  ;;  %v43_v35 = vld [vmem:[%s374_s1 + $0xd8] sm:$0xff]  ;;  %v199_v36 = vpack.c.bf16 %v25_v33, %v24_v32  ;;  %v44_v40 = vld [vmem:[%s374_s1 + $0xe0] sm:$0xff]  ;;  %s138_s26 = sshll.u32 %s238_s25, 4  ;;  %vm130_vm0 = vcmask 253952   ;;  %s139_s26 = int_to_ptr.vmem [resolvable:$true] %s138_s26 }
   0xd   :  { %192 = vmatpush3.bf16.msra.mxu0 %v191_v22  ;;  %v201_v37 = vpack.c.bf16 %v43_v35, %v42_v34  ;;  %v26_v38 = vld [vmem:[%s374_s1 + $0x50] sm:$0xff]  ;;  %v27_v39 = vld [vmem:[%s374_s1 + $0x58] sm:$0xff]  ;;  %v45_v41 = vld [vmem:[%s374_s1 + $0xe8] sm:$0xff]  ;;  %v53_v54 = vrot.slane %v15_v28, %v52_v52  ;;  %s218_s27 = scalar_lea.vmem %s139_s26, 32  ;;  %p219_p1 = scmp.lt.s32.totalorder %s139_s26, %s139_s26 }
   0xe   :  { %194 = vmatprep.subr.bf16.mxu0 %v193_v23  ;;  %v203_v42 = vpack.c.bf16 %v27_v39, %v26_v38  ;;  %v205_v43 = vpack.c.bf16 %v45_v41, %v44_v40  ;;  %v28_v44 = vld [vmem:[%s374_s1 + $0x60] sm:$0xff]  ;;  %v29_v45 = vld [vmem:[%s374_s1 + $0x68] sm:$0xff]  ;;  %v46_v46 = vld [vmem:[%s374_s1 + $0xf0] sm:$0xff] }
   0xf   :  { %v47_v47 = vld [vmem:[%s374_s1 + $0xf8] sm:$0xff]  ;;  %v207_v48 = vpack.c.bf16 %v29_v45, %v28_v44  ;;  %v30_v50 = vld [vmem:[%s374_s1 + $0x70] sm:$0xff]  ;;  %v48_v56 = vld [vmem:[%s375_s2] sm:$0x1] }
  0x10   :  { %v209_v49 = vpack.c.bf16 %v47_v47, %v46_v46  ;;  %v31_v51 = vld [vmem:[%s374_s1 + $0x78] sm:$0xff]  ;;  %s214_s1 = scalar_lea.vmem %s139_s26, 16 }
  0x11   :  { %196 = vmatpush3.bf16.msra.mxu0 %v195_v30  ;;  %v211_v53 = vpack.c.bf16 %v31_v51, %v30_v50  ;;  %p215_p0 = scmp.ne.s32.totalorder %s139_s26, %s214_s1  ;;  %p220_p2 = scmp.lt.s32.totalorder %s218_s27, %s214_s1 }
  0x12   :  { %198 = vmatprep.subr.bf16.mxu0 %v197_v31 }
  0x13   :  { %p221_p3 = por %p220_p2, %p219_p1 }
  0x15   :  { %200 = vmatpush3.bf16.msra.mxu0 %v199_v36  ;;  %p222_p4 = pnand %p221_p3, %p215_p0 }
  0x16   :  { %202 = vmatprep.subr.bf16.mxu0 %v201_v37 }
  0x19   :  { %204 = vmatpush3.bf16.msra.mxu0 %v203_v42 }
  0x1a   :  { %206 = vmatprep.subr.bf16.mxu0 %v205_v43 }
  0x1d   :  { %208 = vmatpush3.bf16.msra.mxu0 %v207_v48 }
  0x1e   :  { %210 = vmatprep.subr.bf16.mxu0 %v209_v49 }
  0x21   :  { %212 = vmatpush3.bf16.msra.mxu0 %v211_v53 }
  0x24   :  { %125 = vmatmul.mubr.f32.vlgmr.msra.gmra.mrb[0].mxu0 %v53_v54 }
  0xf7   :  { %v178_v55 = vpop.f32.mrb[0].mxu0 }
  0xf8   :  { %v179_v57 = vpop.f32.mrb[1].mxu0 }
  0xf9   :  { %v180_v58 = vadd.f32 %v179_v57, %v178_v55 }
  0xfb   :  { %v127_v59 = vadd.f32 %v180_v58, %v48_v56 }
  0xfd   :  { %131 = vst.msk [vmem:[#allocation2] sm:$0x1] %vm130_vm0, %v127_v59 }
  0xfe   :  { %225 = shalt.err (!%p222_p4)
}
  0xff   :  { %s226_s2 = scalar_lea.hbm %s376_s3, 16 }
 0x100   :  { %p227_p5 = scmp.ne.s32.totalorder %s376_s3, %s226_s2  ;;  %p230_p6 = scmp.lt.u32.totalorder %s226_s2, %s376_s3 }
 0x102   :  { %p232_p7 = pnand %p230_p6, %p227_p5 }
 0x104   :  { %235 = shalt.err (!%p232_p7)
}
 0x105   :  { %141 = dma.vmem_to_hbm [thread:$0]  %s139_s26, 16, %s376_s3, [#allocation3]  }
 0x106   :  { %236 = dma.done.wait [#allocation3], 16  }
 0x107   :  { %237 = vsyncadd [#allocation3], 4294967280 }
 0x108   :  { %145 = vsyncpa [#allocation3], 1 }

</bundles_post_ra>
